<compile_context>
chip_gen: v6e
topology: v6e:2x2x1
jax: 0.10.0
libtpu: 0.0.40
codegen_flags: <defaults>
</compile_context>

<pallas_src>
import jax
import jax.numpy as jnp
from jax.experimental import pallas as pl
from jax.experimental.pallas import tpu as pltpu

_LANE = 1024      # lane-dense slab width: multiple of 128, large enough for unmasked stores
_ROW_TILE = 256   # sublane rows per tile: multiple of 8 -> 1 MiB f32 tiles


def _sigmoid_power_kernel(params_ref, x_ref, o_ref):
    # params_ref lives in SMEM: [power, scale, offset, eps]
    power = params_ref[0]
    scale = params_ref[1]
    offset = params_ref[2]
    eps = params_ref[3]

    x = x_ref[...].astype(jnp.float32)
    base = x + eps
    # pow with a positive float exponent on a positive base: exp(p * log(base)).
    # exp/log go to the EUP slot and are hidden under the HBM DMA.
    y = jnp.exp(power * jnp.log(base))
    o_ref[...] = (y * scale + offset).astype(o_ref.dtype)


def sigmoid_power_forward(pixels, logit, scale, offset, *, max_power=1.0, eps=1e-5):
    """pixels: [N, C, H, W]. logit/scale/offset: shape-(1,) learned params."""
    N, C, H, W = pixels.shape
    dtype = pixels.dtype
    total = N * C * H * W

    # Scalar parameter setup (wrapper-side glue, plain JAX on 1-element arrays).
    power = jax.nn.sigmoid(logit[0].astype(jnp.float32)) * jnp.float32(max_power)
    params = jnp.stack([
        power,
        scale[0].astype(jnp.float32),
        offset[0].astype(jnp.float32),
        jnp.float32(eps),
    ])

    # Repack into a lane-dense, (8,128)-aligned 2D slab [R, _LANE].
    chunk = 8 * _LANE
    padded = pl.cdiv(total, chunk) * chunk
    flat = pixels.reshape(-1)
    if padded != total:
        # Zero pad -> base = eps > 0 in the tail, values discarded on output.
        flat = jnp.pad(flat, (0, padded - total))
    R = padded // _LANE
    x2d = flat.reshape(R, _LANE)

    tr = min(_ROW_TILE, R)                          # both are multiples of 8
    grid = (pl.cdiv(R, tr),)

    itemsize = jnp.dtype(dtype).itemsize
    cost = pl.CostEstimate(
        flops=3 * total,                            # add, mul, add
        transcendentals=2 * total,                  # exp + log
        bytes_accessed=2 * total * itemsize,        # read + write
    )

    out2d = pl.pallas_call(
        _sigmoid_power_kernel,
        out_shape=jax.ShapeDtypeStruct((R, _LANE), dtype),
        grid=grid,
        in_specs=[
            pl.BlockSpec(memory_space=pltpu.MemorySpace.SMEM),   # scalar params, whole array
            pl.BlockSpec((tr, _LANE), lambda i: (i, 0)),         # tiled, double-buffered input
        ],
        out_specs=pl.BlockSpec((tr, _LANE), lambda i: (i, 0)),   # tiled, lane-dense output
        compiler_params=pltpu.CompilerParams(
            dimension_semantics=("parallel",),      # shards grid steps across v7x's 2 TCs
        ),
        cost_estimate=cost,
    )(params, x2d)

    return out2d.reshape(-1)[:total].reshape(N, C, H, W)


if __name__ == "__main__":
    key = jax.random.PRNGKey(0)
    N, C, H, W = 2, 4, 16, 16

    # Pixel-intensity-like inputs in [0, 1).
    x = jax.random.uniform(key, (N, C, H, W), dtype=jnp.float32)

    # Deterministic parameter init matching SigmoidPower.__init__
    # (max_power=1, init_scale=1, init_offset=0, eps=1e-5):
    logit = jnp.zeros((1,), jnp.float32)        # torch.zeros(1)
    scale = jnp.full((1,), 1.0, jnp.float32)    # torch.full([1], init_scale)
    offset = jnp.full((1,), 0.0, jnp.float32)   # torch.full([1], init_offset)

    out = sigmoid_power_forward(x, logit, scale, offset, max_power=1.0, eps=1e-5)
    out = jax.block_until_ready(out)

    # Reference check (pure JAX).
    power_ref = jax.nn.sigmoid(logit[0]) * 1.0
    ref = (x + 1e-5) ** power_ref * scale[0] + offset[0]
    assert out.shape == (N, C, H, W)
    assert jnp.allclose(out, ref, atol=1e-5, rtol=1e-5)

    print("KERNEL_OK")
</pallas_src>

<mosaic_0001>
module attributes {stable_mosaic.version = 11 : i64} {
  func.func @_sigmoid_power_kernel(%arg0: i32, %arg1: memref<4xf32, #tpu.memory_space<smem>>, %arg2: memref<8x1024xf32, #tpu.memory_space<vmem>>, %arg3: memref<8x1024xf32, #tpu.memory_space<vmem>>) attributes {dimension_semantics = [#tpu.dimension_semantics<parallel>], iteration_bounds = array<i64: 1>, scalar_prefetch = 0 : i64, scratch_operands = 0 : i64, tpu.core_type = #tpu.core_type<tc>, window_params = [{transform_indices = @transform_0, window_bounds = array<i64: 4>}, {transform_indices = @transform_1, window_bounds = array<i64: 8, 1024>}, {transform_indices = @transform_2, window_bounds = array<i64: 8, 1024>}]} {
    %c0 = arith.constant 0 : index
    %0 = memref.load %arg1[%c0] : memref<4xf32, #tpu.memory_space<smem>>
    %c1 = arith.constant 1 : index
    %1 = memref.load %arg1[%c1] : memref<4xf32, #tpu.memory_space<smem>>
    %c2 = arith.constant 2 : index
    %2 = memref.load %arg1[%c2] : memref<4xf32, #tpu.memory_space<smem>>
    %c3 = arith.constant 3 : index
    %3 = memref.load %arg1[%c3] : memref<4xf32, #tpu.memory_space<smem>>
    %c0_0 = arith.constant 0 : index
    %c0_1 = arith.constant 0 : index
    %4 = vector.load %arg2[%c0_0, %c0_1] : memref<8x1024xf32, #tpu.memory_space<vmem>>, vector<8x1024xf32>
    %5 = vector.broadcast %3 : f32 to vector<8x1024xf32>
    %6 = arith.addf %4, %5 : vector<8x1024xf32>
    %7 = math.log %6 : vector<8x1024xf32>
    %8 = vector.broadcast %0 : f32 to vector<8x1024xf32>
    %9 = arith.mulf %8, %7 : vector<8x1024xf32>
    %10 = math.exp %9 : vector<8x1024xf32>
    %11 = vector.broadcast %1 : f32 to vector<8x1024xf32>
    %12 = arith.mulf %10, %11 : vector<8x1024xf32>
    %13 = vector.broadcast %2 : f32 to vector<8x1024xf32>
    %14 = arith.addf %12, %13 : vector<8x1024xf32>
    %c0_2 = arith.constant 0 : index
    %c0_3 = arith.constant 0 : index
    %15 = vector.load %arg3[%c0_2, %c0_3] : memref<8x1024xf32, #tpu.memory_space<vmem>>, vector<8x1024xf32>
    tpu.vector_store %arg3[%c0_2, %c0_3], %14 {strides = array<i32>} : memref<8x1024xf32, #tpu.memory_space<vmem>>, vector<8x1024xf32>,
    return
  }
  func.func @transform_0(%arg0: i32) -> i32 {
    %c0_i32 = arith.constant 0 : i32
    %c0_i32_0 = arith.constant 0 : i32
    return %c0_i32 : i32
  }
  func.func @transform_1(%arg0: i32) -> (i32, i32) {
    %c0_i32 = arith.constant 0 : i32
    %c0_i32_0 = arith.constant 0 : i32
    return %arg0, %c0_i32 : i32, i32
  }
  func.func @transform_2(%arg0: i32) -> (i32, i32) {
    %c0_i32 = arith.constant 0 : i32
    %c0_i32_0 = arith.constant 0 : i32
    return %arg0, %c0_i32 : i32, i32
  }
}

</mosaic_0001>

<bundles_post_ra>
// kernel: tpu_custom_call.1
= control target key start
LH: loop header
LB: loop body
LE: loop exit
PB: predicated region body
PF: predicated region fallthrough
CT: control target
= control target key end

     0   :  { %7 = vsyncpa [#allocation5], 0  ;;  %s258_s0 = inlined_call_operand.hbm [shape: f32[4], index: 0, kind: input, shape index: {}]   ;;  %s259_s1 = inlined_call_operand.hbm [shape: f32[8,1024], index: 1, kind: input, shape index: {}]   ;;  %s260_s2 = inlined_call_operand.hbm [shape: f32[8,1024], index: 2, kind: output, shape index: {}]  }
   0x1   :  { %8 = vsyncpa [#allocation3], 0 }
   0x2   :  { %9 = vsyncpa [#allocation4], 0  ;;  %s231_s9 = smov [#allocation2]   ;;  %s232_s12 = smov [#allocation6]  }
   0x3   :  { %17 = dma.hbm_to_smem %s258_s0, 16, %s231_s9, [#allocation5]  }
   0x4   :  { %s24_s13 = sshll.u32 %s232_s12, 4  ;;  %s25_s13 = int_to_ptr.vmem [resolvable:$true] %s24_s13 }
   0x5   :  { %s193_s14 = scalar_lea.vmem %s25_s13, 1024  ;;  %p198_p1 = scmp.lt.s32.totalorder %s25_s13, %s25_s13 }
   0x6   :  { %p194_p0 = scmp.ne.s32.totalorder %s25_s13, %s193_s14  ;;  %p199_p2 = scmp.lt.s32.totalorder %s193_s14, %s193_s14 }
   0x8   :  { %p200_p3 = por %p199_p2, %p198_p1 }
   0xa   :  { %p201_p4 = pnand %p200_p3, %p194_p0 }
   0xc   :  { %204 = shalt.err (!%p201_p4)
}
   0xd   :  { %27 = dma.hbm_to_vmem [thread:$0]  %s259_s1, 1024, %s25_s13, [#allocation3]  }
   0xe   :  { %225 = dma.done.wait [#allocation5], 16  }
   0xf   :  { %226 = vsyncadd [#allocation5], 4294967280 }
  0x10   :  { %227 = dma.done.wait [#allocation3], 1024  }
  0x11   :  { %228 = vsyncadd [#allocation3], 4294966272 }
  0x12   :  { %34 = sfence }
  0x13   :  { %s141_s0 = sld [smem:[#allocation2 + $0x3]]  ;;  %v39_v0 = vld [vmem:[#allocation6] sm:$0xff]  ;;  %v40_v1 = vld [vmem:[#allocation6 + $0x8] sm:$0xff]  ;;  %v41_v2 = vld [vmem:[#allocation6 + $0x10] sm:$0xff]  ;;  %s233_s19 = smov [#allocation7]  }
  0x14   :  { %v42_v3 = vld [vmem:[#allocation6 + $0x18] sm:$0xff]  ;;  %v43_v5 = vld [vmem:[#allocation6 + $0x20] sm:$0xff]  ;;  %v44_v9 = vld [vmem:[#allocation6 + $0x28] sm:$0xff]  ;;  %s35_s1 = sld [smem:[#allocation2]]  ;;  %s129_s20 = sshll.u32 %s233_s19, 4  ;;  %s130_s20 = int_to_ptr.vmem [resolvable:$true] %s129_s20 }
  0x15   :  { %v45_v11 = vld [vmem:[#allocation6 + $0x30] sm:$0xff]  ;;  %v46_v13 = vld [vmem:[#allocation6 + $0x38] sm:$0xff]  ;;  %s139_s17 = sld [smem:[#allocation2 + $0x1]]  ;;  %s205_s21 = scalar_lea.vmem %s130_s20, 1024 }
  0x16   :  { %s140_s18 = sld [smem:[#allocation2 + $0x2]]  ;;  %p206_p5 = scmp.ne.s32.totalorder %s130_s20, %s205_s21 }
  0x17   :  { %p210_p6 = scmp.lt.s32.totalorder %s130_s20, %s130_s20  ;;  %p211_p7 = scmp.lt.s32.totalorder %s205_s21, %s205_s21 }
  0x19   :  { %v47_v4 = vstv %s141_s0  ;;  %p212_p8 = por %p211_p7, %p210_p6 }
  0x1a   :  { %v48_v6 = vadd.f32 %v47_v4, %v39_v0  ;;  %v49_v7 = vadd.f32 %v47_v4, %v40_v1  ;;  %v50_v8 = vadd.f32 %v47_v4, %v41_v2  ;;  %v51_v10 = vadd.f32 %v47_v4, %v42_v3 }
  0x1b   :  { %v52_v12 = vadd.f32 %v47_v4, %v43_v5  ;;  %v53_v14 = vadd.f32 %v47_v4, %v44_v9  ;;  %v54_v15 = vadd.f32 %v47_v4, %v45_v11  ;;  %v55_v16 = vadd.f32 %v47_v4, %v46_v13  ;;  %p213_p9 = pnand %p212_p8, %p206_p5 }
  0x1c   :  { %145 = vlog2.f32 %v48_v6  ;;  %v72_v18 = vstv %s35_s1  ;;  %v97_v50 = vstv %s139_s17  ;;  %v106_v52 = vstv %s140_s18 }
  0x1d   :  { %147 = vlog2.f32 %v49_v7 }
  0x1e   :  { %149 = vlog2.f32 %v50_v8 }
  0x1f   :  { %151 = vlog2.f32 %v51_v10 }
  0x20   :  { %153 = vlog2.f32 %v52_v12 }
  0x21   :  { %155 = vlog2.f32 %v53_v14 }
  0x22   :  { %157 = vlog2.f32 %v54_v15 }
  0x23   :  { %159 = vlog2.f32 %v55_v16 }
  0x29   :  { %v146_v17 = vpop.eup %145 }
  0x2a   :  { %v148_v19 = vpop.eup %147  ;;  %v57_v20 = vmul.f32 0.6931472, %v146_v17 }
  0x2b   :  { %v150_v21 = vpop.eup %149  ;;  %v59_v22 = vmul.f32 0.6931472, %v148_v19 }
  0x2c   :  { %v152_v23 = vpop.eup %151  ;;  %v73_v24 = vmul.f32 %v72_v18, %v57_v20  ;;  %v61_v25 = vmul.f32 0.6931472, %v150_v21 }
  0x2d   :  { %v154_v26 = vpop.eup %153  ;;  %v74_v27 = vmul.f32 %v72_v18, %v59_v22  ;;  %v63_v28 = vmul.f32 0.6931472, %v152_v23 }
  0x2e   :  { %v156_v29 = vpop.eup %155  ;;  %v81_v30 = vmul.f32 1.442695, %v73_v24  ;;  %v75_v31 = vmul.f32 %v72_v18, %v61_v25  ;;  %v65_v32 = vmul.f32 0.6931472, %v154_v26 }
  0x2f   :  { %v158_v33 = vpop.eup %157  ;;  %v83_v34 = vmul.f32 1.442695, %v74_v27  ;;  %v76_v35 = vmul.f32 %v72_v18, %v63_v28  ;;  %v67_v36 = vmul.f32 0.6931472, %v156_v29 }
  0x30   :  { %v160_v37 = vpop.eup %159  ;;  %161 = vpow2.f32 %v81_v30  ;;  %v85_v38 = vmul.f32 1.442695, %v75_v31  ;;  %v77_v39 = vmul.f32 %v72_v18, %v65_v32  ;;  %v69_v40 = vmul.f32 0.6931472, %v158_v33 }
  0x31   :  { %163 = vpow2.f32 %v83_v34  ;;  %v87_v41 = vmul.f32 1.442695, %v76_v35  ;;  %v78_v42 = vmul.f32 %v72_v18, %v67_v36  ;;  %v71_v43 = vmul.f32 0.6931472, %v160_v37 }
  0x32   :  { %165 = vpow2.f32 %v85_v38  ;;  %v89_v44 = vmul.f32 1.442695, %v77_v39  ;;  %v79_v45 = vmul.f32 %v72_v18, %v69_v40 }
  0x33   :  { %167 = vpow2.f32 %v87_v41  ;;  %v91_v46 = vmul.f32 1.442695, %v78_v42  ;;  %v80_v47 = vmul.f32 %v72_v18, %v71_v43 }
  0x34   :  { %169 = vpow2.f32 %v89_v44  ;;  %v93_v48 = vmul.f32 1.442695, %v79_v45 }
  0x35   :  { %171 = vpow2.f32 %v91_v46  ;;  %v95_v49 = vmul.f32 1.442695, %v80_v47 }
  0x36   :  { %173 = vpow2.f32 %v93_v48 }
  0x37   :  { %175 = vpow2.f32 %v95_v49 }
  0x3d   :  { %v162_v51 = vpop.eup %161 }
  0x3e   :  { %v164_v53 = vpop.eup %163  ;;  %v98_v54 = vmul.f32 %v162_v51, %v97_v50 }
  0x3f   :  { %v166_v55 = vpop.eup %165  ;;  %v99_v56 = vmul.f32 %v164_v53, %v97_v50 }
  0x40   :  { %v168_v57 = vpop.eup %167  ;;  %v107_v58 = vadd.f32 %v106_v52, %v98_v54  ;;  %v100_v59 = vmul.f32 %v166_v55, %v97_v50 }
  0x41   :  { %v170_v60 = vpop.eup %169  ;;  %v108_v61 = vadd.f32 %v106_v52, %v99_v56  ;;  %v101_v62 = vmul.f32 %v168_v57, %v97_v50 }
  0x42   :  { %v172_v63 = vpop.eup %171  ;;  %115 = vst [vmem:[#allocation7] sm:$0xff] %v107_v58  ;;  %v109_v0 = vadd.f32 %v106_v52, %v100_v59  ;;  %v102_v1 = vmul.f32 %v170_v60, %v97_v50 }
  0x43   :  { %v174_v2 = vpop.eup %173  ;;  %116 = vst [vmem:[#allocation7 + $0x8] sm:$0xff] %v108_v61  ;;  %v110_v3 = vadd.f32 %v106_v52, %v101_v62  ;;  %v103_v4 = vmul.f32 %v172_v63, %v97_v50 }
  0x44   :  { %v176_v5 = vpop.eup %175  ;;  %117 = vst [vmem:[#allocation7 + $0x10] sm:$0xff] %v109_v0  ;;  %v111_v6 = vadd.f32 %v106_v52, %v102_v1  ;;  %v104_v7 = vmul.f32 %v174_v2, %v97_v50 }
  0x45   :  { %118 = vst [vmem:[#allocation7 + $0x18] sm:$0xff] %v110_v3  ;;  %v112_v8 = vadd.f32 %v106_v52, %v103_v4  ;;  %v105_v9 = vmul.f32 %v176_v5, %v97_v50 }
  0x46   :  { %119 = vst [vmem:[#allocation7 + $0x20] sm:$0xff] %v111_v6  ;;  %v113_v10 = vadd.f32 %v106_v52, %v104_v7 }
  0x47   :  { %120 = vst [vmem:[#allocation7 + $0x28] sm:$0xff] %v112_v8  ;;  %v114_v11 = vadd.f32 %v106_v52, %v105_v9 }
  0x48   :  { %121 = vst [vmem:[#allocation7 + $0x30] sm:$0xff] %v113_v10 }
  0x49   :  { %122 = vst [vmem:[#allocation7 + $0x38] sm:$0xff] %v114_v11 }
  0x4a   :  { %216 = shalt.err (!%p213_p9)
}
  0x4b   :  { %132 = dma.vmem_to_hbm [thread:$0]  %s130_s20, 1024, %s260_s2, [#allocation4]  }
  0x4c   :  { %229 = dma.done.wait [#allocation4], 1024  }
  0x4d   :  { %230 = vsyncadd [#allocation4], 4294966272 }
  0x4e   :  { %136 = vsyncpa [#allocation3], 1 }
  0x4f   :  { %137 = vsyncpa [#allocation4], 1 }
  0x50   :  { %138 = vsyncpa [#allocation5], 1 }

</bundles_post_ra>
